<compile_context>
chip_gen: v5e
topology: v5e:2x2
jax: 0.10.0
libtpu: 0.0.40
codegen_flags: <defaults>
</compile_context>

<pallas_src>
import functools
import math

import jax
import jax.numpy as jnp
from jax.experimental import pallas as pl
from jax.experimental.pallas import tpu as pltpu

_LOG_P_MIN = math.log(1e-7)    # clip(p, min=1e-7) expressed in log space
_LOG_OH_MIN = math.log(1e-4)   # log of the clipped off-label one-hot value
_OH_MIN = 1e-4                 # clipped off-label one-hot value


def _sce_kernel(score_ref, label_ref, out_ref, acc_ref, *,
                total_n, tile_n, steps_per_chunk,
                loss_weight1, loss_weight2):
    step = pl.program_id(1)

    @pl.when(step == 0)
    def _init():
        acc_ref[0] = jnp.float32(0.0)

    # Row mask for partial last tiles and for phantom tiles (remaining <= 0)
    # introduced by the ceil-split of steps across chunks.
    tile_idx = pl.program_id(0) * steps_per_chunk + step
    remaining = total_n - tile_idx * tile_n
    row_idx = jax.lax.broadcasted_iota(jnp.int32, (tile_n, 1), 0)
    row_mask = row_idx < remaining                                # (TN, 1)

    x = score_ref[...].astype(jnp.float32)                        # (TN, C)
    lbl = label_ref[...]                                          # (TN, 1) int32
    col = jax.lax.broadcasted_iota(jnp.int32, x.shape, 1)
    is_label = col == lbl                                         # (TN, C)

    # log-softmax along the class (lane) axis: 1 full-tile exp, 1 (TN,1) log.
    # Padded-row garbage stays row-local; `combined` is masked below.
    m = jnp.max(x, axis=1, keepdims=True)
    s = x - m
    e = jnp.exp(s)
    sumexp = jnp.sum(e, axis=1, keepdims=True)
    log_p = jnp.maximum(s - jnp.log(sumexp), jnp.float32(_LOG_P_MIN))

    # Select-then-reduce: gather the label column via masked lane sums.
    sum_log = jnp.sum(log_p, axis=1, keepdims=True)                       # (TN,1)
    lbl_log = jnp.sum(jnp.where(is_label, log_p, 0.0), axis=1, keepdims=True)
    e_lbl = jnp.sum(jnp.where(is_label, e, 0.0), axis=1, keepdims=True)
    p_lbl = jnp.maximum(e_lbl / sumexp, jnp.float32(1e-7))                # exact divide

    # ce_row  = -((1 - 1e-4) * log_p[label] + 1e-4 * sum_c log_p)
    # rce_row = -log(1e-4) * (sum_c clip(p,1e-7) - p[label]) ~= -log(1e-4)*(1 - p[label])
    combined = (jnp.float32(-loss_weight1)
                * ((1.0 - _OH_MIN) * lbl_log + _OH_MIN * sum_log)
                + jnp.float32(-loss_weight2 * _LOG_OH_MIN) * (1.0 - p_lbl))
    combined = jnp.where(row_mask, combined, 0.0)                         # (TN,1)

    acc_ref[0] += jnp.sum(combined)

    @pl.when(step == steps_per_chunk - 1)
    def _finalize():
        out_ref[...] = jnp.full(out_ref.shape, acc_ref[0], dtype=out_ref.dtype)


def _round_up(x, m):
    return ((x + m - 1) // m) * m


def _default_num_chunks():
    # Two TensorCores per chip only on v7x-class parts; on single-TC chips the
    # outer chunk axis is a serial loop and pure overhead.
    try:
        kind = jax.devices()[0].device_kind.lower()
    except Exception:
        return 1
    if "v7" in kind or "7x" in kind:
        return 2
    return 1


def symmetric_cross_entropy_loss(cls_score, label, *,
                                 loss_weight=1.0,
                                 loss_weight1=1.0,
                                 loss_weight2=0.1,
                                 tile_n=4096,
                                 num_chunks=None):
    """cls_score: (N, C) float (f32 or bf16 -- bf16 preferred for large N,
    it is DMA'd as-is and upcast in-kernel); label: (N,) int.
    Returns the scalar f32 symmetric cross-entropy loss."""
    n, c = cls_score.shape
    label2d = label.astype(jnp.int32).reshape(n, 1)

    # Big row tiles (multiple of 8) for the memory-bound reduction, capped at N.
    tile_n = _round_up(max(8, min(tile_n, _round_up(n, 8))), 8)
    num_steps = pl.cdiv(n, tile_n)

    if num_chunks is None:
        num_chunks = _default_num_chunks()
    num_chunks = max(1, min(num_chunks, num_steps))
    # Ceil-split steps across chunks; phantom (chunk, step) pairs are clamped
    # in the index_map and fully masked in-kernel, so odd step counts keep
    # both chunks busy instead of collapsing to one.
    steps_per_chunk = pl.cdiv(num_steps, num_chunks)

    kernel = functools.partial(
        _sce_kernel,
        total_n=n, tile_n=tile_n, steps_per_chunk=steps_per_chunk,
        loss_weight1=float(loss_weight1), loss_weight2=float(loss_weight2))

    def block_map(ci, si):
        t = ci * steps_per_chunk + si
        return (jnp.minimum(t, num_steps - 1), 0)   # clamp phantom tiles

    partials = pl.pallas_call(
        kernel,
        out_shape=jax.ShapeDtypeStruct((num_chunks, 8, 128), jnp.float32),
        grid_spec=pltpu.PrefetchScalarGridSpec(
            num_scalar_prefetch=0,
            grid=(num_chunks, steps_per_chunk),
            in_specs=[
                pl.BlockSpec((tile_n, c), block_map),
                pl.BlockSpec((tile_n, 1), block_map),
            ],
            out_specs=pl.BlockSpec((1, 8, 128), lambda ci, si: (ci, 0, 0)),
            scratch_shapes=[pltpu.SMEM((1,), jnp.float32)],
        ),
        compiler_params=pltpu.CompilerParams(
            dimension_semantics=("parallel", "arbitrary")),
    )(cls_score, label2d)

    # Mean over rows + global loss_weight (w1/w2 already folded in-kernel).
    return jnp.float32(loss_weight) * jnp.sum(partials[:, 0, 0]) / jnp.float32(n)


def _reference(cls_score, label, loss_weight=1.0, loss_weight1=1.0, loss_weight2=0.1):
    c = cls_score.shape[1]
    p = jax.nn.softmax(cls_score.astype(jnp.float32), axis=1)
    oh = jax.nn.one_hot(label, c, dtype=jnp.float32)
    p = jnp.clip(p, 1e-7, 1.0)
    oh = jnp.clip(oh, 1e-4, 1.0)
    ce = jnp.mean(-jnp.sum(oh * jnp.log(p), axis=1))
    rce = jnp.mean(-jnp.sum(p * jnp.log(oh), axis=1))
    return loss_weight * (loss_weight1 * ce + loss_weight2 * rce)


if __name__ == "__main__":
    key = jax.random.PRNGKey(0)
    # num_classes=80 in the module -> C = num_classes + 1 = 81
    cases = [
        dict(n=16, c=81, tile_n=4096, num_chunks=None, dtype=jnp.float32),   # single tile
        dict(n=300, c=81, tile_n=128, num_chunks=2, dtype=jnp.float32),      # odd steps: phantom tile
        dict(n=256, c=81, tile_n=64, num_chunks=2, dtype=jnp.float32),       # 2 chunks x 2 steps
        dict(n=200, c=81, tile_n=128, num_chunks=None, dtype=jnp.bfloat16),  # bf16 DMA path
    ]
    for i, cfg in enumerate(cases):
        k1, k2 = jax.random.split(jax.random.fold_in(key, i))
        cls_score = jax.random.normal(k1, (cfg["n"], cfg["c"]),
                                      dtype=jnp.float32).astype(cfg["dtype"])
        label = jax.random.randint(k2, (cfg["n"],), 0, cfg["c"], dtype=jnp.int32)
        loss = symmetric_cross_entropy_loss(
            cls_score, label, tile_n=cfg["tile_n"], num_chunks=cfg["num_chunks"])
        loss = jax.block_until_ready(loss)
        ref = _reference(cls_score, label)
        assert jnp.allclose(loss, ref, rtol=1e-4, atol=1e-4), (cfg, float(loss), float(ref))
    print("KERNEL_OK")
</pallas_src>

<mosaic_0001>
module attributes {stable_mosaic.version = 11 : i64} {
  func.func @_sce_kernel(%arg0: i32, %arg1: i32, %arg2: memref<16x81xf32, #tpu.memory_space<vmem>>, %arg3: memref<16x1xi32, #tpu.memory_space<vmem>>, %arg4: memref<1x8x128xf32, #tpu.memory_space<vmem>>, %arg5: memref<1xf32, #tpu.memory_space<smem>>) attributes {dimension_semantics = [#tpu.dimension_semantics<parallel>, #tpu.dimension_semantics<arbitrary>], iteration_bounds = array<i64: 1, 1>, scalar_prefetch = 0 : i64, scratch_operands = 1 : i64, tpu.core_type = #tpu.core_type<tc>, window_params = [{transform_indices = @transform_0, window_bounds = array<i64: 16, 81>}, {transform_indices = @transform_1, window_bounds = array<i64: 16, 1>}, {transform_indices = @transform_2, window_bounds = array<i64: 1, 8, 128>}]} {
    %c0_i32 = arith.constant 0 : i32
    %0 = arith.cmpi eq, %arg1, %c0_i32 : i32
    %1 = arith.extui %0 : i1 to i32
    %c0_i32_0 = arith.constant 0 : i32
    %2 = arith.cmpi ne, %1, %c0_i32_0 : i32
    scf.if %2 {
      %cst_24 = arith.constant 0.000000e+00 : f32
      %c0_25 = arith.constant 0 : index
      %64 = memref.load %arg5[%c0_25] : memref<1xf32, #tpu.memory_space<smem>>
      memref.store %cst_24, %arg5[%c0_25] : memref<1xf32, #tpu.memory_space<smem>>
    } else {
    }
    %c1_i32 = arith.constant 1 : i32
    %3 = arith.muli %arg0, %c1_i32 : i32
    %4 = arith.addi %3, %arg1 : i32
    %c16_i32 = arith.constant 16 : i32
    %5 = arith.muli %4, %c16_i32 : i32
    %c16_i32_1 = arith.constant 16 : i32
    %6 = arith.subi %c16_i32_1, %5 : i32
    %7 = tpu.iota {dimensions = array<i32: 0>} : vector<16x1xi32>
    %8 = vector.broadcast %6 : i32 to vector<16x1xi32>
    %9 = arith.cmpi slt, %7, %8 : vector<16x1xi32>
    %c0 = arith.constant 0 : index
    %c0_2 = arith.constant 0 : index
    %10 = vector.load %arg2[%c0, %c0_2] : memref<16x81xf32, #tpu.memory_space<vmem>>, vector<16x81xf32>
    %c0_3 = arith.constant 0 : index
    %c0_4 = arith.constant 0 : index
    %11 = vector.load %arg3[%c0_3, %c0_4] : memref<16x1xi32, #tpu.memory_space<vmem>>, vector<16x1xi32>
    %12 = tpu.iota {dimensions = array<i32: 1>} : vector<16x81xi32>
    %13 = vector.broadcast %11 : vector<16x1xi32> to vector<16x81xi32>
    %14 = arith.cmpi eq, %12, %13 : vector<16x81xi32>
    %cst = arith.constant dense<0xFF800000> : vector<16xf32>
    %15 = vector.multi_reduction <maximumf>, %10, %cst [1] : vector<16x81xf32> to vector<16xf32>
    %16 = vector.shape_cast %15 : vector<16xf32> to vector<16x1xf32>
    %17 = vector.broadcast %16 : vector<16x1xf32> to vector<16x81xf32>
    %18 = arith.subf %10, %17 : vector<16x81xf32>
    %19 = math.exp %18 : vector<16x81xf32>
    %cst_5 = arith.constant dense<0.000000e+00> : vector<16xf32>
    %20 = vector.multi_reduction <add>, %19, %cst_5 [1] : vector<16x81xf32> to vector<16xf32>
    %21 = vector.shape_cast %20 : vector<16xf32> to vector<16x1xf32>
    %22 = math.log %21 : vector<16x1xf32>
    %23 = vector.broadcast %22 : vector<16x1xf32> to vector<16x81xf32>
    %24 = arith.subf %18, %23 : vector<16x81xf32>
    %cst_6 = arith.constant -16.1180954 : f32
    %25 = vector.broadcast %cst_6 : f32 to vector<16x81xf32>
    %26 = arith.maximumf %24, %25 : vector<16x81xf32>
    %cst_7 = arith.constant dense<0.000000e+00> : vector<16xf32>
    %27 = vector.multi_reduction <add>, %26, %cst_7 [1] : vector<16x81xf32> to vector<16xf32>
    %28 = vector.shape_cast %27 : vector<16xf32> to vector<16x1xf32>
    %cst_8 = arith.constant 0.000000e+00 : f32
    %29 = vector.broadcast %cst_8 : f32 to vector<16x81xf32>
    %30 = arith.select %14, %26, %29 : vector<16x81xi1>, vector<16x81xf32>
    %cst_9 = arith.constant dense<0.000000e+00> : vector<16xf32>
    %31 = vector.multi_reduction <add>, %30, %cst_9 [1] : vector<16x81xf32> to vector<16xf32>
    %32 = vector.shape_cast %31 : vector<16xf32> to vector<16x1xf32>
    %cst_10 = arith.constant 0.000000e+00 : f32
    %33 = vector.broadcast %cst_10 : f32 to vector<16x81xf32>
    %34 = arith.select %14, %19, %33 : vector<16x81xi1>, vector<16x81xf32>
    %cst_11 = arith.constant dense<0.000000e+00> : vector<16xf32>
    %35 = vector.multi_reduction <add>, %34, %cst_11 [1] : vector<16x81xf32> to vector<16xf32>
    %36 = vector.shape_cast %35 : vector<16xf32> to vector<16x1xf32>
    %37 = arith.divf %36, %21 : vector<16x1xf32>
    %cst_12 = arith.constant 1.000000e-07 : f32
    %38 = vector.broadcast %cst_12 : f32 to vector<16x1xf32>
    %39 = arith.maximumf %37, %38 : vector<16x1xf32>
    %cst_13 = arith.constant 0.999899983 : f32
    %40 = vector.broadcast %cst_13 : f32 to vector<16x1xf32>
    %41 = arith.mulf %40, %32 : vector<16x1xf32>
    %cst_14 = arith.constant 9.99999974E-5 : f32
    %42 = vector.broadcast %cst_14 : f32 to vector<16x1xf32>
    %43 = arith.mulf %42, %28 : vector<16x1xf32>
    %44 = arith.addf %41, %43 : vector<16x1xf32>
    %cst_15 = arith.constant -1.000000e+00 : f32
    %45 = vector.broadcast %cst_15 : f32 to vector<16x1xf32>
    %46 = arith.mulf %45, %44 : vector<16x1xf32>
    %cst_16 = arith.constant 1.000000e+00 : f32
    %47 = vector.broadcast %cst_16 : f32 to vector<16x1xf32>
    %48 = arith.subf %47, %39 : vector<16x1xf32>
    %cst_17 = arith.constant 0.921034038 : f32
    %49 = vector.broadcast %cst_17 : f32 to vector<16x1xf32>
    %50 = arith.mulf %49, %48 : vector<16x1xf32>
    %51 = arith.addf %46, %50 : vector<16x1xf32>
    %cst_18 = arith.constant 0.000000e+00 : f32
    %52 = vector.broadcast %cst_18 : f32 to vector<16x1xf32>
    %53 = arith.select %9, %51, %52 : vector<16x1xi1>, vector<16x1xf32>
    %c0_19 = arith.constant 0 : index
    %54 = memref.load %arg5[%c0_19] : memref<1xf32, #tpu.memory_space<smem>>
    %55 = vector.shape_cast %53 : vector<16x1xf32> to vector<1x16x1xf32>
    %cst_20 = arith.constant dense<0.000000e+00> : vector<1xf32>
    %56 = vector.multi_reduction <add>, %55, %cst_20 [1, 2] : vector<1x16x1xf32> to vector<1xf32>
    %57 = vector.shape_cast %56 : vector<1xf32> to vector<1x1x1xf32>
    %58 = vector.extract %57[0, 0, 0] : f32 from vector<1x1x1xf32>
    %59 = arith.addf %54, %58 : f32
    %c0_21 = arith.constant 0 : index
    %60 = memref.load %arg5[%c0_21] : memref<1xf32, #tpu.memory_space<smem>>
    memref.store %59, %arg5[%c0_21] : memref<1xf32, #tpu.memory_space<smem>>
    %c0_i32_22 = arith.constant 0 : i32
    %61 = arith.cmpi eq, %arg1, %c0_i32_22 : i32
    %62 = arith.extui %61 : i1 to i32
    %c0_i32_23 = arith.constant 0 : i32
    %63 = arith.cmpi ne, %62, %c0_i32_23 : i32
    scf.if %63 {
      %c0_24 = arith.constant 0 : index
      %64 = memref.load %arg5[%c0_24] : memref<1xf32, #tpu.memory_space<smem>>
      %65 = vector.broadcast %64 : f32 to vector<1x8x128xf32>
      %c0_25 = arith.constant 0 : index
      %c0_26 = arith.constant 0 : index
      %c0_27 = arith.constant 0 : index
      %66 = vector.load %arg4[%c0_25, %c0_26, %c0_27] : memref<1x8x128xf32, #tpu.memory_space<vmem>>, vector<1x8x128xf32>
      tpu.vector_store %arg4[%c0_25, %c0_26, %c0_27], %65 {strides = array<i32>} : memref<1x8x128xf32, #tpu.memory_space<vmem>>, vector<1x8x128xf32>,
    } else {
    }
    return
  }
  func.func @transform_0(%arg0: i32, %arg1: i32) -> (i32, i32) {
    %c1_i32 = arith.constant 1 : i32
    %0 = arith.muli %arg0, %c1_i32 : i32
    %1 = arith.addi %0, %arg1 : i32
    %c0_i32 = arith.constant 0 : i32
    %2 = arith.minsi %1, %c0_i32 : i32
    %c0_i32_0 = arith.constant 0 : i32
    %c0_i32_1 = arith.constant 0 : i32
    return %2, %c0_i32_0 : i32, i32
  }
  func.func @transform_1(%arg0: i32, %arg1: i32) -> (i32, i32) {
    %c1_i32 = arith.constant 1 : i32
    %0 = arith.muli %arg0, %c1_i32 : i32
    %1 = arith.addi %0, %arg1 : i32
    %c0_i32 = arith.constant 0 : i32
    %2 = arith.minsi %1, %c0_i32 : i32
    %c0_i32_0 = arith.constant 0 : i32
    %c0_i32_1 = arith.constant 0 : i32
    return %2, %c0_i32_0 : i32, i32
  }
  func.func @transform_2(%arg0: i32, %arg1: i32) -> (i32, i32, i32) {
    %c0_i32 = arith.constant 0 : i32
    %c0_i32_0 = arith.constant 0 : i32
    %c0_i32_1 = arith.constant 0 : i32
    return %arg0, %c0_i32, %c0_i32_0 : i32, i32, i32
  }
}

</mosaic_0001>

<bundles_post_ra>
// kernel: tpu_custom_call.1
= control target key start
LH: loop header
LB: loop body
LE: loop exit
PB: predicated region body
PF: predicated region fallthrough
CT: control target
= control target key end

     0   :  { %vm105_vm0 = vcmask 662528   ;;  %v297_v3 = vmov 0   ;;  %s343_s0 = inlined_call_operand.vmem [shape: f32[16,81], index: 0, kind: input, shape index: {}]   ;;  %s344_s1 = inlined_call_operand.vmem [shape: s32[16,1], index: 1, kind: input, shape index: {}]   ;;  %s345_s2 = inlined_call_operand.hbm [shape: f32[1,8,128], index: 2, kind: output, shape index: {}]  }
   0x1   :  { %v91_v0 = vld [vmem:[%s343_s0] sm:$0xff]  ;;  %257 = vset.pattern.permute.xlu2 %v297_v3  ;;  %258 = vset.pattern.permute.xlu0 %v297_v3 }
   0x2   :  { %v93_v1 = vld [vmem:[%s344_s1] sm:$0xff]  ;;  %v106_v2 = vsel %vm105_vm0, %v91_v0, -inf }
   0x3   :  { %7 = vsyncpa [#allocation4], 0  ;;  %107 = vmax.xlane.f32.xlu0 %v106_v2  ;;  %98 = vperm.xlu2 %257, %v93_v1   ;;  %v92_v4 = vld [vmem:[%s343_s0 + $0x8] sm:$0xff]  ;;  %v95_v9 = vlaneseq  ;;  %vm203_vm11 = vcmask 7168   ;;  %s298_s0 = smov [#allocation3]   ;;  %s232_s19 = sshll.u32 %s345_s2, 4  ;;  %s233_s19 = int_to_ptr.hbm [resolvable:$true] %s232_s19 }
   0x4   :  { %v109_v5 = vsel %vm105_vm0, %v92_v4, -inf  ;;  %v94_v6 = vld [vmem:[%s344_s1 + $0x8] sm:$0xff]  ;;  %s230_s1 = sshll.u32 %s298_s0, 4  ;;  %s231_s1 = int_to_ptr.vmem [resolvable:$true] %s230_s1 }
   0x5   :  { %v96_v11 = vand.u32 127, %v95_v9 }
   0xb   :  { %110 = vmax.xlane.f32.xlu0 %v109_v5  ;;  %101 = vperm.xlu2 %257, %v94_v6  }
  0x5d   :  { %v99_v12 = vpop.permute.xlu2 %98 }
  0x5e   :  { %vm103_vm1 = vcmp.eq.s32.totalorder %v96_v11, %v99_v12 }
  0x65   :  { %v102_v21 = vpop.permute.xlu2 %101 }
  0x66   :  { %vm104_vm2 = vcmp.eq.s32.totalorder %v96_v11, %v102_v21 }
  0x76   :  { %v108_v7 = vpop.xlane.xlu0 %107 }
  0x77   :  { %v112_v8 = vsub.f32 %v91_v0, %v108_v7 }
  0x79   :  { %v114_v10 = vmul.f32 1.442695, %v112_v8 }
  0x7b   :  { %259 = vpow2.f32 %v114_v10 }
  0x7e   :  { %v111_v13 = vpop.xlane.xlu0 %110 }
  0x7f   :  { %v113_v14 = vsub.f32 %v92_v4, %v111_v13 }
  0x81   :  { %v260_v15 = vpop.eup %259  ;;  %v116_v16 = vmul.f32 1.442695, %v113_v14 }
  0x82   :  { %v118_v17 = vsel %vm105_vm0, %v260_v15, 0.0  ;;  %v146_v18 = vsel %vm103_vm1, %v260_v15, 0.0 }
  0x83   :  { %261 = vpow2.f32 %v116_v16  ;;  %119 = vadd.xlane.f32.xlu1 %v118_v17  ;;  %v148_v19 = vsel %vm105_vm0, %v146_v18, 0.0 }
  0x84   :  { %149 = vadd.xlane.f32.xlu0 %v148_v19 }
  0x89   :  { %v262_v20 = vpop.eup %261 }
  0x8a   :  { %v121_v22 = vsel %vm105_vm0, %v262_v20, 0.0  ;;  %v147_v23 = vsel %vm104_vm2, %v262_v20, 0.0 }
  0x8b   :  { %122 = vadd.xlane.f32.xlu1 %v121_v22  ;;  %v151_v24 = vsel %vm105_vm0, %v147_v23, 0.0 }
  0x93   :  { %152 = vadd.xlane.f32.xlu1 %v151_v24 }
  0xf6   :  { %v120_v25 = vpop.xlane.xlu1 %119 }
  0xf7   :  { %263 = vlog2.f32 %v120_v25  ;;  %v165_v50 = vand.u32 2147483648, %v120_v25  ;;  %vm159_vm4 = vweird.f32 %v120_v25  ;;  %v163_v52 = vand.u32 2147483647, %v120_v25  ;;  %v150_v54 = vpop.xlane.xlu0 %149 }
  0xf9   :  { %v166_v58 = vor.u32 1.1754944e-38, %v165_v50  ;;  %vm164_vm9 = vcmp.eq.f32.partialorder %v163_v52, 8.507059e+37 }
  0xfd   :  { %v264_v26 = vpop.eup %263 }
  0xfe   :  { %v123_v27 = vpop.xlane.xlu1 %122  ;;  %v125_v28 = vmul.f32 0.6931472, %v264_v26 }
  0xff   :  { %265 = vlog2.f32 %v123_v27  ;;  %v180_v55 = vand.u32 2147483648, %v123_v27  ;;  %vm174_vm7 = vweird.f32 %v123_v27  ;;  %v178_v57 = vand.u32 2147483647, %v123_v27 }
 0x100   :  { %v128_v29 = vsub.f32 %v112_v8, %v125_v28  ;;  %267 = vrcp.f32 %v120_v25 }
 0x101   :  { %269 = vrcp.f32 %v123_v27  ;;  %v181_v61 = vor.u32 1.1754944e-38, %v180_v55  ;;  %vm179_vm10 = vcmp.eq.f32.partialorder %v178_v57, 8.507059e+37 }
 0x102   :  { %v130_v30 = vmax.f32 %v128_v29, -16.118095 }
 0x104   :  { %v132_v31 = vsel %vm105_vm0, %v130_v30, 0.0  ;;  %v138_v32 = vsel %vm103_vm1, %v130_v30, 0.0 }
 0x105   :  { %v266_v33 = vpop.eup %265  ;;  %133 = vadd.xlane.f32.xlu2 %v132_v31  ;;  %v140_v34 = vsel %vm105_vm0, %v138_v32, 0.0 }
 0x106   :  { %141 = vadd.xlane.f32.xlu1 %v140_v34  ;;  %v127_v35 = vmul.f32 0.6931472, %v266_v33  ;;  %v268_v41 = vpop.eup %267  ;;  %v153_v51 = vpop.xlane.xlu1 %152 }
 0x107   :  { %v270_v42 = vpop.eup %269  ;;  %v155_v43 = vmul.f32 %v268_v41, %v120_v25  ;;  %vm160_vm3 = vweird.f32 %v268_v41 }
 0x108   :  { %v129_v36 = vsub.f32 %v113_v14, %v127_v35  ;;  %v170_v44 = vmul.f32 %v270_v42, %v123_v27  ;;  %vm175_vm5 = vweird.f32 %v270_v42  ;;  %vm161_vm6 = vmor %vm159_vm4, %vm160_vm3 }
 0x109   :  { %v156_v45 = vsub.f32 1.0, %v155_v43  ;;  %vm176_vm8 = vmor %vm174_vm7, %vm175_vm5 }
 0x10a   :  { %v131_v37 = vmax.f32 %v129_v36, -16.118095  ;;  %v171_v46 = vsub.f32 1.0, %v170_v44 }
 0x10b   :  { %v157_v47 = vmul.f32 %v268_v41, %v156_v45 }
 0x10c   :  { %v135_v38 = vsel %vm105_vm0, %v131_v37, 0.0  ;;  %v139_v39 = vsel %vm104_vm2, %v131_v37, 0.0  ;;  %v172_v48 = vmul.f32 %v270_v42, %v171_v46 }
 0x10d   :  { %136 = vadd.xlane.f32.xlu0 %v135_v38  ;;  %v143_v40 = vsel %vm105_vm0, %v139_v39, 0.0  ;;  %v158_v49 = vadd.f32 %v268_v41, %v157_v47 }
 0x10e   :  { %v173_v53 = vadd.f32 %v270_v42, %v172_v48 }
 0x10f   :  { %v162_v56 = vsel %vm161_vm6, %v268_v41, %v158_v49 }
 0x110   :  { %v177_v59 = vsel %vm176_vm8, %v270_v42, %v173_v53  ;;  %v167_v60 = vsel %vm164_vm9, %v166_v58, %v162_v56 }
 0x111   :  { %v182_v62 = vsel %vm179_vm10, %v181_v61, %v177_v59  ;;  %v168_v1 = vmul.f32 %v167_v60, %v150_v54 }
 0x112   :  { %v183_v3 = vmul.f32 %v182_v62, %v153_v51 }
 0x113   :  { %v184_v6 = vmax.f32 %v168_v1, 1e-07 }
 0x114   :  { %v185_v7 = vmax.f32 %v183_v3, 1e-07 }
 0x115   :  { %144 = vadd.xlane.f32.xlu0 %v143_v40  ;;  %v194_v9 = vsub.f32 1.0, %v184_v6 }
 0x116   :  { %v195_v11 = vsub.f32 1.0, %v185_v7 }
 0x117   :  { %v196_v15 = vmul.f32 0.92103404, %v194_v9 }
 0x118   :  { %v197_v17 = vmul.f32 0.92103404, %v195_v11 }
 0x178   :  { %v134_v63 = vpop.xlane.xlu2 %133 }
 0x179   :  { %v142_v0 = vpop.xlane.xlu1 %141  ;;  %v188_v4 = vmul.f32 0.0001, %v134_v63 }
 0x17a   :  { %v186_v5 = vmul.f32 0.9999, %v142_v0 }
 0x17c   :  { %v190_v8 = vadd.f32 %v188_v4, %v186_v5 }
 0x17e   :  { %v192_v12 = vmul.f32 -1.0, %v190_v8 }
 0x180   :  { %v137_v2 = vpop.xlane.xlu0 %136  ;;  %v198_v19 = vadd.f32 %v196_v15, %v192_v12 }
 0x181   :  { %v189_v13 = vmul.f32 0.0001, %v137_v2 }
 0x182   :  { %v204_v21 = vsel %vm203_vm11, %v198_v19, 0.0 }
 0x188   :  { %v145_v10 = vpop.xlane.xlu0 %144 }
 0x189   :  { %v187_v14 = vmul.f32 0.9999, %v145_v10 }
 0x18b   :  { %v191_v16 = vadd.f32 %v189_v13, %v187_v14 }
 0x18d   :  { %v193_v18 = vmul.f32 -1.0, %v191_v16 }
 0x18f   :  { %v199_v20 = vadd.f32 %v197_v17, %v193_v18 }
 0x191   :  { %v205_v22 = vsel %vm203_vm11, %v199_v20, 0.0 }
 0x192   :  { %v206_v23 = vadd.f32 %v205_v22, %v204_v21 }
 0x194   :  { %207 = vadd.xlane.f32.xlu1 %v206_v23 }
 0x207   :  { %v208_v24 = vpop.xlane.xlu1 %207 }
 0x208   :  { %v209_v25 = vrot.slane %v208_v24, 4 }
 0x20a   :  { %v210_v26 = vadd.f32 %v209_v25, %v208_v24 }
 0x20c   :  { %v211_v27 = vrot.slane %v210_v26, 2 }
 0x20e   :  { %v212_v28 = vadd.f32 %v211_v27, %v210_v26 }
 0x210   :  { %v213_v29 = vrot.slane %v212_v28, 1 }
 0x212   :  { %v214_v30 = vadd.f32 %v213_v29, %v212_v28 }
 0x214   :  { %253 = vpush %v214_v30 }
 0x245   :  { %s254_s20 = spop %253 }
 0x246   :  { %v223_v31 = vstv %s254_s20 }
 0x247   :  { %224 = vst [vmem:[#allocation3] sm:$0xff] %v223_v31 }
 0x248   :  { %235 = dma.vmem_to_hbm [thread:$0]  %s231_s1, 128, %s233_s19, [#allocation4]  }
 0x249   :  { %295 = dma.done.wait [#allocation4], 128  }
 0x24a   :  { %296 = vsyncadd [#allocation4], 4294967168 }
 0x24b   :  { %240 = vsyncpa [#allocation4], 1 }

</bundles_post_ra>
